<compile_context>
chip_gen: v5e
topology: v5e:2x2
jax: 0.10.0
libtpu: 0.0.40
codegen_flags: <defaults>
</compile_context>

<pallas_src>
import math

import jax
import jax.numpy as jnp
from jax.experimental import pallas as pl
from jax.experimental.pallas import tpu as pltpu


def _round_up(a, m):
    return ((a + m - 1) // m) * m


def _vmem_limit_bytes():
    """Generation-aware scoped-VMEM limit (v5e default is only 16 MiB)."""
    cap = 128 * 1024 * 1024
    try:
        info = pltpu.get_tpu_info()
        cap = int(getattr(info, "vmem_capacity_bytes", cap))
    except Exception:
        pass
    return min((cap * 3) // 4, 96 * 1024 * 1024)


def _pick_batch_tile(B, max_tile):
    """Largest multiple-of-8 tile <= max_tile that minimizes dead batch rows."""
    max_tile = max(8, _round_up(max_tile, 8))
    b8 = _round_up(B, 8)
    if b8 <= max_tile:
        return b8
    best, best_pad = max_tile, None
    lo = max(8, ((max_tile // 2) // 8) * 8)
    for bm in range(max_tile, lo - 1, -8):
        pad = _round_up(b8, bm) - b8
        if best_pad is None or pad < best_pad:
            best, best_pad = bm, pad
            if pad == 0:
                break
    return best


def _make_mlp_kernel(*, multi_k, cache_h):
    """Build the fused MLP kernel specialized on (multi_k, cache_h)."""

    def kernel(x_ref, w1_ref, b1_ref, w2_ref, b2_ref, o_ref, *scratch):
        si = 0
        acc_ref = None
        h_ref = None
        if multi_k:
            acc_ref = scratch[si]
            si += 1
        if cache_h:
            h_ref = scratch[si]
            si += 1

        j = pl.program_id(1)
        k = pl.program_id(2)

        def compute_h():
            h = jnp.dot(x_ref[...], w1_ref[...],
                        preferred_element_type=jnp.float32)
            return jnp.maximum(h + b1_ref[...], 0.0)   # b1 is (1, bk)

        if cache_h:
            # First-layer work only on the first out tile; cache bf16 result.
            @pl.when(j == 0)
            def _():
                h_ref[k] = compute_h().astype(h_ref.dtype)

            h_k = h_ref[k]
        else:
            h_k = compute_h().astype(w2_ref.dtype)

        contrib = jnp.dot(h_k, w2_ref[...], preferred_element_type=jnp.float32)

        if not multi_k:
            # Single hid tile: no accumulator round-trip, store directly.
            o_ref[...] = (contrib + b2_ref[...]).astype(o_ref.dtype)
        else:
            @pl.when(k == 0)
            def _():
                acc_ref[...] = jnp.zeros_like(acc_ref)

            acc_ref[...] += contrib

            @pl.when(k == pl.num_programs(2) - 1)
            def _():
                o_ref[...] = (acc_ref[...] + b2_ref[...]).astype(o_ref.dtype)

    return kernel


def prepare_res_mlp_params(w1, b1, w2, b2, *, out_tile=512, hid_tile=512):
    """Pad + cast the weights ONCE (not per forward call).

    w1: [in_dim, hid]; b1: [hid]; w2: [hid, out]; b2: [out]  (pre-transposed
    vs. PyTorch's [out, in] layout, so the kernel does x @ W).
    """
    assert out_tile % 128 == 0 and hid_tile % 128 == 0
    in_dim, hid = w1.shape
    out_dim = w2.shape[1]

    bn = min(out_tile, _round_up(out_dim, 128))
    bk = min(hid_tile, _round_up(hid, 128))
    in_p = _round_up(in_dim, 128)
    hid_p = _round_up(hid, bk)
    out_p = _round_up(out_dim, bn)

    w1p = jnp.zeros((in_p, hid_p), jnp.bfloat16).at[:in_dim, :hid].set(
        w1.astype(jnp.bfloat16))
    b1p = jnp.zeros((1, hid_p), jnp.float32).at[0, :hid].set(
        b1.astype(jnp.float32))
    w2p = jnp.zeros((hid_p, out_p), jnp.bfloat16).at[:hid, :out_dim].set(
        w2.astype(jnp.bfloat16))
    b2p = jnp.zeros((1, out_p), jnp.float32).at[0, :out_dim].set(
        b2.astype(jnp.float32))

    return dict(w1=w1p, b1=b1p, w2=w2p, b2=b2p,
                in_dim=in_dim, hid=hid, out_dim=out_dim,
                in_p=in_p, hid_p=hid_p, out_p=out_p, bn=bn, bk=bk)


def res_mlp_forward(x, params, *, batch_tile=512, out_dtype=None):
    """Fused relu(x @ W1 + b1) @ W2 + b2 on pre-padded params."""
    B, in_dim = x.shape
    assert in_dim == params["in_dim"]
    out_dim = params["out_dim"]
    in_p, hid_p, out_p = params["in_p"], params["hid_p"], params["out_p"]
    bn, bk = params["bn"], params["bk"]
    out_dtype = out_dtype or x.dtype   # pass jnp.bfloat16 to halve writeback

    bm = _pick_batch_tile(B, batch_tile)
    B_p = _round_up(B, bm)

    xb = x.astype(jnp.bfloat16)
    if B_p != B or in_p != in_dim:
        xb = jnp.zeros((B_p, in_p), jnp.bfloat16).at[:B, :in_dim].set(xb)

    num_i = B_p // bm
    num_j = out_p // bn
    num_k = hid_p // bk
    grid = (num_i, num_j, num_k)

    multi_k = num_k > 1
    cache_h = num_j > 1
    kernel = _make_mlp_kernel(multi_k=multi_k, cache_h=cache_h)

    scratch = []
    if multi_k:
        scratch.append(pltpu.VMEM((bm, bn), jnp.float32))
    if cache_h:
        scratch.append(pltpu.VMEM((num_k, bm, bk), jnp.bfloat16))

    if cache_h:
        # For j > 0 the W1 / b1 blocks are never read; pin their block index
        # to (0, 0) so Pallas skips the redundant HBM->VMEM copies.
        def w1_map(i, j, k):
            return (0, k * (1 - jnp.minimum(j, 1)))

        def b1_map(i, j, k):
            return (0, k * (1 - jnp.minimum(j, 1)))
    else:
        def w1_map(i, j, k):
            return (0, k)

        def b1_map(i, j, k):
            return (0, k)

    y_p = pl.pallas_call(
        kernel,
        out_shape=jax.ShapeDtypeStruct((B_p, out_p), out_dtype),
        grid_spec=pltpu.PrefetchScalarGridSpec(
            num_scalar_prefetch=0,
            grid=grid,
            in_specs=[
                pl.BlockSpec((bm, in_p), lambda i, j, k: (i, 0)),   # x
                pl.BlockSpec((in_p, bk), w1_map),                   # W1
                pl.BlockSpec((1, bk), b1_map),                      # b1
                pl.BlockSpec((bk, bn), lambda i, j, k: (k, j)),     # W2
                pl.BlockSpec((1, bn), lambda i, j, k: (0, j)),      # b2
            ],
            out_specs=pl.BlockSpec((bm, bn), lambda i, j, k: (i, j)),
            scratch_shapes=scratch,
        ),
        compiler_params=pltpu.CompilerParams(
            # Batch axis is parallel (v7x megacore shards batch across 2 TCs);
            # j and k carry state (h-cache / accumulator) -> arbitrary.
            dimension_semantics=("parallel", "arbitrary", "arbitrary"),
            vmem_limit_bytes=_vmem_limit_bytes(),
        ),
    )(xb, params["w1"], params["b1"], params["w2"], params["b2"])

    if B_p != B or out_p != out_dim:
        y_p = y_p[:B, :out_dim]
    return y_p


def init_linear_params(key, in_features, out_features, dtype=jnp.float32):
    """torch.nn.Linear-style init: U(-1/sqrt(fan_in), 1/sqrt(fan_in)).
    Weight returned pre-transposed as [in_features, out_features]."""
    kw, kb = jax.random.split(key)
    bound = 1.0 / math.sqrt(in_features)
    w = jax.random.uniform(kw, (in_features, out_features), dtype, -bound, bound)
    b = jax.random.uniform(kb, (out_features,), dtype, -bound, bound)
    return w, b


def reference_forward(x, w1, b1, w2, b2):
    """Same numerics as the kernel: bf16 MXU operands, f32 accumulation."""
    xb, w1b, w2b = (t.astype(jnp.bfloat16) for t in (x, w1, w2))
    h = jnp.maximum(
        jnp.dot(xb, w1b, preferred_element_type=jnp.float32) + b1, 0.0)
    return jnp.dot(h.astype(jnp.bfloat16), w2b,
                   preferred_element_type=jnp.float32) + b2


def _check(x, w1, b1, w2, b2, *, out_tile, hid_tile, batch_tile):
    params = prepare_res_mlp_params(w1, b1, w2, b2,
                                    out_tile=out_tile, hid_tile=hid_tile)
    y = res_mlp_forward(x, params, batch_tile=batch_tile)
    y = jax.block_until_ready(y)

    y_ref = reference_forward(x, w1, b1, w2, b2)
    assert y.shape == y_ref.shape
    assert jnp.allclose(y, y_ref, atol=1e-4, rtol=1e-4), "mismatch vs. reference"

    # Sanity vs. a pure-fp32 reference (loose tolerance for bf16 operands).
    y_f32 = jnp.maximum(x @ w1 + b1, 0.0) @ w2 + b2
    assert jnp.allclose(y, y_f32, atol=5e-2, rtol=5e-2), "mismatch vs. fp32 ref"
    return y


if __name__ == "__main__":
    root = jax.random.PRNGKey(0)

    # Config 1: ResMLP(in_dim=16, out_dim=200, hid_shapes=[160]); batch=32.
    # With out_tile=128 / hid_tile=128 / batch_tile=16 this exercises a
    # (2, 2, 2) grid: h-cache across out tiles, W1-DMA suppression for j>0,
    # and the 2-step hid reduction with the f32 accumulator epilogue.
    k_x, k_l1, k_l2, k_x2, k_l3, k_l4 = jax.random.split(root, 6)
    in_dim, hid, out_dim, batch = 16, 160, 200, 32
    x = jax.random.normal(k_x, (batch, in_dim), jnp.float32)
    w1, b1 = init_linear_params(k_l1, in_dim, hid)
    w2, b2 = init_linear_params(k_l2, hid, out_dim)
    _check(x, w1, b1, w2, b2, out_tile=128, hid_tile=128, batch_tile=16)

    # Config 2: ResMLP(in_dim=16, out_dim=8, hid_shapes=[64]); batch=12.
    # Single hid tile + single out tile -> specialized no-scratch kernel path,
    # plus non-multiple-of-8 batch padding.
    in_dim2, hid2, out_dim2, batch2 = 16, 64, 8, 12
    x2 = jax.random.normal(k_x2, (batch2, in_dim2), jnp.float32)
    w1b_, b1b_ = init_linear_params(k_l3, in_dim2, hid2)
    w2b_, b2b_ = init_linear_params(k_l4, hid2, out_dim2)
    _check(x2, w1b_, b1b_, w2b_, b2b_, out_tile=128, hid_tile=128,
           batch_tile=16)

    print("KERNEL_OK")
</pallas_src>

<mosaic_0001>
module attributes {stable_mosaic.version = 11 : i64} {
  func.func @kernel(%arg0: i32, %arg1: i32, %arg2: i32, %arg3: memref<16x128xbf16, #tpu.memory_space<vmem>>, %arg4: memref<128x128xbf16, #tpu.memory_space<vmem>>, %arg5: memref<1x128xf32, #tpu.memory_space<vmem>>, %arg6: memref<128x128xbf16, #tpu.memory_space<vmem>>, %arg7: memref<1x128xf32, #tpu.memory_space<vmem>>, %arg8: memref<16x128xf32, #tpu.memory_space<vmem>>, %arg9: memref<16x128xf32, #tpu.memory_space<vmem>>, %arg10: memref<2x16x128xbf16, #tpu.memory_space<vmem>>) attributes {dimension_semantics = [#tpu.dimension_semantics<parallel>, #tpu.dimension_semantics<arbitrary>, #tpu.dimension_semantics<arbitrary>], iteration_bounds = array<i64: 2, 2, 2>, scalar_prefetch = 0 : i64, scratch_operands = 2 : i64, tpu.core_type = #tpu.core_type<tc>, window_params = [{transform_indices = @transform_0, window_bounds = array<i64: 16, 128>}, {transform_indices = @transform_1, window_bounds = array<i64: 128, 128>}, {transform_indices = @transform_2, window_bounds = array<i64: 1, 128>}, {transform_indices = @transform_3, window_bounds = array<i64: 128, 128>}, {transform_indices = @transform_4, window_bounds = array<i64: 1, 128>}, {transform_indices = @transform_5, window_bounds = array<i64: 16, 128>}]} {
    %c0_i32 = arith.constant 0 : i32
    %0 = arith.cmpi eq, %arg1, %c0_i32 : i32
    %1 = arith.extui %0 : i1 to i32
    %c0_i32_0 = arith.constant 0 : i32
    %2 = arith.cmpi ne, %1, %c0_i32_0 : i32
    scf.if %2 {
      %c0_11 = arith.constant 0 : index
      %c0_12 = arith.constant 0 : index
      %17 = vector.load %arg3[%c0_11, %c0_12] : memref<16x128xbf16, #tpu.memory_space<vmem>>, vector<16x128xbf16>
      %c0_13 = arith.constant 0 : index
      %c0_14 = arith.constant 0 : index
      %18 = vector.load %arg4[%c0_13, %c0_14] : memref<128x128xbf16, #tpu.memory_space<vmem>>, vector<128x128xbf16>
      %cst_15 = arith.constant dense<0.000000e+00> : vector<16x128xf32>
      %19 = tpu.matmul %17, %18, %cst_15 {dimension_numbers = #tpu.dot_dimension_numbers<[1], [0], [0], [1], [0, 0, 1, 1], [], []>} : vector<16x128xbf16>, vector<128x128xbf16>, vector<16x128xf32> -> vector<16x128xf32>
      %c0_16 = arith.constant 0 : index
      %c0_17 = arith.constant 0 : index
      %20 = vector.load %arg5[%c0_16, %c0_17] : memref<1x128xf32, #tpu.memory_space<vmem>>, vector<1x128xf32>
      %21 = vector.broadcast %20 : vector<1x128xf32> to vector<16x128xf32>
      %22 = arith.addf %19, %21 : vector<16x128xf32>
      %cst_18 = arith.constant 0.000000e+00 : f32
      %23 = vector.broadcast %cst_18 : f32 to vector<16x128xf32>
      %24 = arith.maximumf %22, %23 : vector<16x128xf32>
      %25 = arith.truncf %24 : vector<16x128xf32> to vector<16x128xbf16>
      %26 = arith.index_cast %arg2 : i32 to index
      %c0_19 = arith.constant 0 : index
      %c0_20 = arith.constant 0 : index
      %27 = vector.load %arg10[%26, %c0_19, %c0_20] : memref<2x16x128xbf16, #tpu.memory_space<vmem>>, vector<1x16x128xbf16>
      %28 = vector.shape_cast %27 : vector<1x16x128xbf16> to vector<16x128xbf16>
      %29 = vector.shape_cast %25 : vector<16x128xbf16> to vector<1x16x128xbf16>
      tpu.vector_store %arg10[%26, %c0_19, %c0_20], %29 {strides = array<i32>} : memref<2x16x128xbf16, #tpu.memory_space<vmem>>, vector<1x16x128xbf16>,
    } else {
    }
    %3 = arith.index_cast %arg2 : i32 to index
    %c0 = arith.constant 0 : index
    %c0_1 = arith.constant 0 : index
    %4 = vector.load %arg10[%3, %c0, %c0_1] : memref<2x16x128xbf16, #tpu.memory_space<vmem>>, vector<1x16x128xbf16>
    %5 = vector.shape_cast %4 : vector<1x16x128xbf16> to vector<16x128xbf16>
    %c0_2 = arith.constant 0 : index
    %c0_3 = arith.constant 0 : index
    %6 = vector.load %arg6[%c0_2, %c0_3] : memref<128x128xbf16, #tpu.memory_space<vmem>>, vector<128x128xbf16>
    %cst = arith.constant dense<0.000000e+00> : vector<16x128xf32>
    %7 = tpu.matmul %5, %6, %cst {dimension_numbers = #tpu.dot_dimension_numbers<[1], [0], [0], [1], [0, 0, 1, 1], [], []>} : vector<16x128xbf16>, vector<128x128xbf16>, vector<16x128xf32> -> vector<16x128xf32>
    %c0_i32_4 = arith.constant 0 : i32
    %8 = arith.cmpi eq, %arg2, %c0_i32_4 : i32
    %9 = arith.extui %8 : i1 to i32
    %c0_i32_5 = arith.constant 0 : i32
    %10 = arith.cmpi ne, %9, %c0_i32_5 : i32
    scf.if %10 {
      %cst_11 = arith.constant 0.000000e+00 : f32
      %17 = vector.broadcast %cst_11 : f32 to vector<16x128xf32>
      %c0_12 = arith.constant 0 : index
      %c0_13 = arith.constant 0 : index
      %18 = vector.load %arg9[%c0_12, %c0_13] : memref<16x128xf32, #tpu.memory_space<vmem>>, vector<16x128xf32>
      tpu.vector_store %arg9[%c0_12, %c0_13], %17 {strides = array<i32>} : memref<16x128xf32, #tpu.memory_space<vmem>>, vector<16x128xf32>,
    } else {
    }
    %c0_6 = arith.constant 0 : index
    %c0_7 = arith.constant 0 : index
    %11 = vector.load %arg9[%c0_6, %c0_7] : memref<16x128xf32, #tpu.memory_space<vmem>>, vector<16x128xf32>
    %12 = arith.addf %11, %7 : vector<16x128xf32>
    %c0_8 = arith.constant 0 : index
    %c0_9 = arith.constant 0 : index
    %13 = vector.load %arg9[%c0_8, %c0_9] : memref<16x128xf32, #tpu.memory_space<vmem>>, vector<16x128xf32>
    tpu.vector_store %arg9[%c0_8, %c0_9], %12 {strides = array<i32>} : memref<16x128xf32, #tpu.memory_space<vmem>>, vector<16x128xf32>,
    %c1_i32 = arith.constant 1 : i32
    %14 = arith.cmpi eq, %arg2, %c1_i32 : i32
    %15 = arith.extui %14 : i1 to i32
    %c0_i32_10 = arith.constant 0 : i32
    %16 = arith.cmpi ne, %15, %c0_i32_10 : i32
    scf.if %16 {
      %c0_11 = arith.constant 0 : index
      %c0_12 = arith.constant 0 : index
      %17 = vector.load %arg9[%c0_11, %c0_12] : memref<16x128xf32, #tpu.memory_space<vmem>>, vector<16x128xf32>
      %c0_13 = arith.constant 0 : index
      %c0_14 = arith.constant 0 : index
      %18 = vector.load %arg7[%c0_13, %c0_14] : memref<1x128xf32, #tpu.memory_space<vmem>>, vector<1x128xf32>
      %19 = vector.broadcast %18 : vector<1x128xf32> to vector<16x128xf32>
      %20 = arith.addf %17, %19 : vector<16x128xf32>
      %c0_15 = arith.constant 0 : index
      %c0_16 = arith.constant 0 : index
      %21 = vector.load %arg8[%c0_15, %c0_16] : memref<16x128xf32, #tpu.memory_space<vmem>>, vector<16x128xf32>
      tpu.vector_store %arg8[%c0_15, %c0_16], %20 {strides = array<i32>} : memref<16x128xf32, #tpu.memory_space<vmem>>, vector<16x128xf32>,
    } else {
    }
    return
  }
  func.func @transform_0(%arg0: i32, %arg1: i32, %arg2: i32) -> (i32, i32) {
    %c0_i32 = arith.constant 0 : i32
    %c0_i32_0 = arith.constant 0 : i32
    return %arg0, %c0_i32 : i32, i32
  }
  func.func @transform_1(%arg0: i32, %arg1: i32, %arg2: i32) -> (i32, i32) {
    %c1_i32 = arith.constant 1 : i32
    %0 = arith.minsi %arg1, %c1_i32 : i32
    %c1_i32_0 = arith.constant 1 : i32
    %1 = arith.subi %c1_i32_0, %0 : i32
    %2 = arith.muli %arg2, %1 : i32
    %c0_i32 = arith.constant 0 : i32
    %c0_i32_1 = arith.constant 0 : i32
    return %c0_i32, %2 : i32, i32
  }
  func.func @transform_2(%arg0: i32, %arg1: i32, %arg2: i32) -> (i32, i32) {
    %c1_i32 = arith.constant 1 : i32
    %0 = arith.minsi %arg1, %c1_i32 : i32
    %c1_i32_0 = arith.constant 1 : i32
    %1 = arith.subi %c1_i32_0, %0 : i32
    %2 = arith.muli %arg2, %1 : i32
    %c0_i32 = arith.constant 0 : i32
    %c0_i32_1 = arith.constant 0 : i32
    return %c0_i32, %2 : i32, i32
  }
  func.func @transform_3(%arg0: i32, %arg1: i32, %arg2: i32) -> (i32, i32) {
    %c0_i32 = arith.constant 0 : i32
    return %arg2, %arg1 : i32, i32
  }
  func.func @transform_4(%arg0: i32, %arg1: i32, %arg2: i32) -> (i32, i32) {
    %c0_i32 = arith.constant 0 : i32
    %c0_i32_0 = arith.constant 0 : i32
    return %c0_i32, %arg1 : i32, i32
  }
  func.func @transform_5(%arg0: i32, %arg1: i32, %arg2: i32) -> (i32, i32) {
    %c0_i32 = arith.constant 0 : i32
    return %arg0, %arg1 : i32, i32
  }
}

</mosaic_0001>

<bundles_post_ra>
// kernel: tpu_custom_call.1
= control target key start
LH: loop header
LB: loop body
LE: loop exit
PB: predicated region body
PF: predicated region fallthrough
CT: control target
= control target key end

     0   :  { %s1951_s0 = inlined_call_operand.hbm [shape: bf16[32,128], index: 0, kind: input, shape index: {}]   ;;  %s1952_s1 = inlined_call_operand.hbm [shape: bf16[128,256], index: 1, kind: input, shape index: {}]   ;;  %s1953_s2 = inlined_call_operand.hbm [shape: f32[1,256], index: 2, kind: input, shape index: {}]   ;;  %s1954_s3 = inlined_call_operand.hbm [shape: bf16[256,256], index: 3, kind: input, shape index: {}]   ;;  %s1955_s4 = inlined_call_operand.vmem [shape: f32[1,256], index: 4, kind: input, shape index: {}]   ;;  %s1956_s5 = inlined_call_operand.hbm [shape: f32[32,256], index: 5, kind: output, shape index: {}]  }
   0x1   :  { %1983 = sst [smem:[#allocation37_spill]] %s1951_s0 }
   0x2   :  { %1984 = sst [smem:[#allocation38_spill]] %s1952_s1 }
   0x3   :  { %1985 = sst [smem:[#allocation39_spill]] %s1953_s2 }
   0x4   :  { %1986 = sst [smem:[#allocation40_spill]] %s1954_s3 }
   0x5   :  { %1987 = sst [smem:[#allocation41_spill]] %s1955_s4 }
   0x6   :  { %1988 = sst [smem:[#allocation42_spill]] %s1956_s5 }
   0x7   :  { %10 = vsyncpa [#allocation5], 0 }
   0x8   :  { %12 = vsyncpa [#allocation5 + $0x1], 0 }
   0x9   :  { %13 = vsyncpa [#allocation8], 0 }
   0xa   :  { %15 = vsyncpa [#allocation8 + $0x1], 0 }
   0xb   :  { %16 = vsyncpa [#allocation11], 0 }
   0xc   :  { %18 = vsyncpa [#allocation11 + $0x1], 0 }
   0xd   :  { %19 = vsyncpa [#allocation6], 0 }
   0xe   :  { %21 = vsyncpa [#allocation6 + $0x1], 0  ;;  %s1513_s18 = smov 0   ;;  %s1515_s19 = smov 0  }
   0xf   :  { %s1517_s20 = smov 0   ;;  %s1519_s21 = smov 0  }
  0x10   :  { %s1521_s22 = smov 0   ;;  %s1523_s23 = smov 0  }
  0x11   :  { %s1525_s24 = smov 0   ;;  %s1527_s25 = smov 0  }
  0x12   :  { %s1529_s26 = smov 0   ;;  %s1531_s27 = smov 0  }
  0x13   :  { %s1533_s28 = smov 0   ;;  %s1535_s29 = smov 0  }
  0x14   :  { %s1537_s30 = smov 0   ;;  %s1539_s6 = smov 0  }
  0x15   :  { %s1541_s7 = smov 0   ;;  %s1543_s8 = smov 0  }
  0x16   :  { %s1545_s9 = smov 0   ;;  %s1547_s10 = smov 0  }
  0x17   :  { %s1549_s11 = smov 0  }
  0x18 LB: > { %1989 = sst [smem:[#allocation17_spill]] %s1402_s18  ;;  %s1609_s12 = sadd.s32 4294967295, %s1474_s11   ;;  %s1474_s11 = sphi %s1549_s11, %s27_s11   ;;  %s1470_s10 = sphi %s1547_s10, %s2064_s10   ;;  %s1466_s9 = sphi %s1545_s9, %s2073_s9   ;;  %s1462_s8 = sphi %s1543_s8, %s2072_s8   ;;  %s1458_s7 = sphi %s1541_s7, %s2059_s7   ;;  %s1454_s6 = sphi %s1539_s6, %s2071_s6   ;;  %s1450_s30 = sphi %s1537_s30, %s2070_s30   ;;  %s1446_s29 = sphi %s1535_s29, %s2058_s29   ;;  %s1442_s28 = sphi %s1533_s28, %s2069_s28   ;;  %s1438_s27 = sphi %s1531_s27, %s2068_s27   ;;  %s1434_s26 = sphi %s1529_s26, %s2067_s26   ;;  %s1430_s25 = sphi %s1527_s25, %s2066_s25   ;;  %s1426_s24 = sphi %s1525_s24, %s2055_s24   ;;  %s1422_s23 = sphi %s1523_s23, %s2065_s23   ;;  %s1418_s22 = sphi %s1521_s22, %s2054_s22   ;;  %s1414_s21 = sphi %s1519_s21, %s2053_s21   ;;  %s1410_s20 = sphi %s1517_s20, %s2052_s20   ;;  %s1406_s19 = sphi %s1515_s19, %s2063_s19   ;;  %s1402_s18 = sphi %s1513_s18, %s2061_s18  }
  0x19   : > { %1990 = sst [smem:[#allocation18_spill]] %s1410_s20  ;;  %s39_s13 = sadd.s32 1, %s1462_s8 }
  0x1a   : > { %1991 = sst [smem:[#allocation19_spill]] %s1414_s21  ;;  %p40_p0 = scmp.ge.s32.totalorder %s39_s13, 2 }
  0x1b   : > { %1992 = sst [smem:[#allocation20_spill]] %s1418_s22  ;;  %s42_s14 = sadd.s32 1, %s1466_s9 }
  0x1c   : > { %1993 = sst [smem:[#allocation21_spill]] %s1422_s23  ;;  %p1972_p1 = scmp.eq.s32.totalorder %s1474_s11, 0 }
  0x1d   : > { %1994 = sst [smem:[#allocation22_spill]] %s1430_s25  ;;  %p1971_p2 = scmp.eq.s32.totalorder %s1609_s12, 0 }
  0x1e   : > { %1995 = sst [smem:[#allocation23_spill]] %s1446_s29  ;;  %s2075_s13 = smov (%p40_p0, %s39_s13), 0 }
  0x1f   : > { %1996 = sst [smem:[#allocation24_spill]] %s1450_s30  ;;  %s2077_s14 = smov (!%p40_p0, %s42_s14), %s1466_s9 }
  0x20   : > { %1997 = sst [smem:[#allocation25_spill]] %s1454_s6  ;;  %p76_p3 = scmp.lt.s32.totalorder %s1466_s9, 1 }
  0x21   : > { %1998 = sst [smem:[#allocation26_spill]] %s1458_s7  ;;  %s87_s15 = sadd.s32 1, %s1434_s26 }
  0x22   : > { %1999 = sst [smem:[#allocation27_spill]] %s1470_s10  ;;  %p44_p4 = scmp.ge.s32.totalorder %s2077_s14, 2 }
  0x23   : > { %2000 = sst [smem:[#allocation28_spill]] %s2075_s13  ;;  %p94_p5 = scmp.ne.s32.totalorder %s1434_s26, %s1430_s25 }
  0x24   : > { %s77_s16 = scalar_select %p76_p3, %s1466_s9, 1 }
  0x25   : > { %s1629_s17 = scalar_select %p44_p4, 0, %s2077_s14  }
  0x26   : > { %s78_s5 = ssub.s32 1, %s77_s16  ;;  %p1633_p6 = por %p94_p5, %p1972_p1 }
  0x27   : > { %2001 = sst [smem:[#allocation29_spill]] %s1629_s17  ;;  %s1638_s30 = smul.u32 %s1462_s8, %s78_s5 }
  0x28   : > { %p80_p7 = scmp.lt.s32.totalorder %s1629_s17, 1  ;;  %p100_p8 = scmp.ne.s32.totalorder %s1430_s25, %s1426_s24 }
  0x29   : > { %p1973_p10 = scmp.lt.s32.totalorder %s1474_s11, 8  ;;  %s262_s2 = sand.u32 1, %s1474_s11  }
  0x2a   : > { %s81_s4 = scalar_select %p80_p7, %s1629_s17, 1 }
  0x2b   : > { %p1646_p9 = por %p100_p8, %p1971_p2  ;;  %s1970_s5 = sand.u32 1, %s1434_s26  }
  0x2c   : > { %s82_s16 = ssub.s32 1, %s81_s4  ;;  %s846_s22 = sshll.u32 %s1970_s5, 6 }
  0x2d   : > { %s2003_s6 = scalar_select %p1646_p9, 1, 0 }
  0x2e   : > { %s83_s3 = smul.u32 %s82_s16, %s2075_s13  ;;  %s847_s24 = sshll.u32 %s1638_s30, 2 }
  0x2f   : > { %2004 = sst [smem:[#allocation30_spill]] %s2003_s6  ;;  %s266_s18 = scalar_lea.vmem [#allocation7], %s846_s22 }
  0x30   : > { %s84_s21 = ssub.s32 %s1638_s30, %s83_s3  ;;  %s2006_s1 = sld [smem:[#allocation38_spill]] }
  0x31   : > { %p85_p11 = scmp.eq.s32.totalorder %s84_s21, 0  ;;  %s277_s4 = sshll.u32 %s266_s18, 4  ;;  %s278_s4 = int_to_ptr.vmem [resolvable:$true] %s277_s4 }
  0x32   : > { %p1668_p12 = pnand %p1973_p10, %p1633_p6  ;;  %p852_p13 = scmp.ge.s32.totalorder %s1474_s11, 1 }
  0x33   : > { %s1659_s25 = scalar_select %p85_p11, %s1434_s26, %s87_s15  }
  0x34   : > { %p336_p0 = scmp.lt.s32.totalorder %s1474_s11, 9  ;;  %s1674_s0 = scalar_lea.sflag [#allocation8], %s262_s2 }
  0x35   : > { %2005 = sst [smem:[#allocation31_spill]] %s1659_s25  ;;  %s1965_s18 = smov 128  }
  0x36   : > { %s274_s6 = scalar_lea.hbm %s2006_s1, %s847_s24  ;;  %s1966_s21 = smov 64  }
  0x37   : > { %s275_s16 = sshll.u32 %s274_s6, 4  ;;  %s1968_s22 = smov 4   ;;  %s276_s16 = int_to_ptr.hbm [resolvable:$true] %s275_s16 }
  0x38   : > { %986 = dma.hbm_to_vmem [thread:$0]  (!%p1668_p12), %s276_s16, 1024, %s278_s4, %s1674_s0, %s1965_s18, %s1966_s21, %s1968_s22  }
  0x39   : > { %p1682_p3 = pnand %p852_p13, %p336_p0  ;;  %s840_s6 = sadd.s32 4294967294, %s1474_s11  }
  0x3a   : > { %s46_s2 = sadd.s32 1, %s1470_s10  ;;  %s53_s7 = sadd.s32 1, %s1446_s29 }
  0x3b   : > { %s2079_s2 = smov (!%p44_p4, %s46_s2), %s1470_s10  ;;  %p60_p5 = scmp.ne.s32.totalorder %s1446_s29, %s1442_s28 }
  0x3c   : > { %p66_p6 = scmp.ne.s32.totalorder %s1442_s28, %s1438_s27  ;;  %p48_p7 = scmp.ge.s32.totalorder %s2079_s2, 2 }
  0x3d   : > { %s2009_s15 = sld [smem:[#allocation17_spill]]  ;;  %s144_s24 = ssub.s32 %s1462_s8, %s2075_s13 }
  0x3e   : > { %p1700_p8 = por %p1972_p1, %p60_p5  ;;  %p1706_p11 = por %p1971_p2, %p66_p6 }
  0x3f   : > { %s2081_s2 = smov (%p48_p7, %s2079_s2), 0  ;;  %s145_s27 = ssub.s32 %s1466_s9, %s1629_s17 }
  0x40   : > { %2012 = sst [smem:[#allocation32_spill]] %s2081_s2  ;;  %s203_s16 = sadd.s32 1, %s1410_s20 }
  0x41   : > { %s50_s18 = ssub.s32 %s1470_s10, %s2081_s2  ;;  %s1717_s21 = sor.u32 %s145_s27, %s144_s24 }
  0x42   : > { %p51_p4 = scmp.eq.s32.totalorder %s50_s18, 0  ;;  %p147_p13 = scmp.eq.s32.totalorder %s1717_s21, 0 }
  0x43   : > { %s200_s22 = sor.u32 %s145_s27, %s50_s18  ;;  %p213_p0 = scmp.ne.s32.totalorder %s1410_s20, %s1406_s19 }
  0x44   : > { %s1723_s5 = scalar_select %p51_p4, %s1446_s29, %s53_s7  }
  0x45   : > { %p201_p5 = scmp.eq.s32.totalorder %s200_s22, 0  ;;  %p214_p6 = scmp.eq.s32.totalorder %s1609_s12, 7 }
  0x46   : > { %2013 = sst [smem:[#allocation33_spill]] %s1723_s5  ;;  %p219_p7 = scmp.ne.s32.totalorder %s1406_s19, %s2009_s15 }
  0x47   : > { %p220_p2 = scmp.eq.s32.totalorder %s840_s6, 7  ;;  %p1731_p1 = por %p214_p6, %p213_p0 }
  0x48   : > { %s1729_s1 = scalar_select %p201_p5, %s1410_s20, %s203_s16  }
  0x49   : > { %s2015_s24 = scalar_select %p1731_p1, 1, 0 }
  0x4a   : > { %2014 = sst [smem:[#allocation34_spill]] %s1729_s1  ;;  %p1735_p10 = por %p220_p2, %p219_p7 }
  0x4b   : > { %2016 = sst [smem:[#allocation35_spill]] %s2015_s24  ;;  %s240_s18 = sand.u32 1, %s1446_s29  }
  0x4c   : > { %s2017_s2 = scalar_select %p1735_p10, 1, 0 }
  0x4d   : > { %s942_s7 = sshll.u32 %s1470_s10, 3  ;;  %s843_s22 = sshll.u32 %s240_s18, 3 }
  0x4e   : > { %2018 = sst [smem:[#allocation36_spill]] %s2017_s2  ;;  %s244_s25 = scalar_lea.vmem [#allocation4], %s843_s22 }
  0x4f   : > { %s2019_s13 = sld [smem:[#allocation37_spill]]  ;;  %s252_s1 = sshll.u32 %s244_s25, 4  ;;  %s253_s1 = int_to_ptr.vmem [resolvable:$true] %s252_s1 }
  0x50   : > { %s2020_s6 = sld [smem:[#allocation21_spill]]  ;;  %p2023_p2 = scmp.lt.s32.totalorder %s1474_s11, 8 }
  0x51   : > { %s2021_s5 = sld [smem:[#allocation20_spill]]  ;;  %s241_s29 = scalar_lea.sflag [#allocation5], %s240_s18 }
  0x52   : > { %s2022_s20 = sld [smem:[#allocation19_spill]]  ;;  %p981_p4 = pnand %p2023_p2, %p1700_p8 }
  0x53   : > { %s2026_s2 = smov 4   ;;  %s2027_s24 = smov 64  }
  0x54   : > { %p2028_p0 = scmp.eq.s32.totalorder %s1474_s11, 0  ;;  %s943_s27 = sshll.u32 %s1462_s8, 5 }
  0x55   : > { %s249_s15 = scalar_lea.hbm %s2019_s13, %s942_s7  ;;  %s2024_s13 = sld [smem:[#allocation39_spill]] }
  0x56   : > { %s250_s16 = sshll.u32 %s249_s15, 4  ;;  %s2025_s15 = sand.u32 1, %s1434_s26   ;;  %s251_s16 = int_to_ptr.hbm [resolvable:$true] %s250_s16 }
  0x57   : > { %s290_s22 = scalar_lea.vmem [#allocation9], %s2025_s15  ;;  %s149_s4 = sadd.s32 1, %s2020_s6 }
  0x58   : > { %s301_s10 = sshll.u32 %s290_s22, 4  ;;  %p156_p8 = scmp.ne.s32.totalorder %s2020_s6, %s2021_s5  ;;  %s302_s10 = int_to_ptr.vmem [resolvable:$true] %s301_s10 }
  0x59   : > { %983 = dma.hbm_to_vmem [thread:$0]  (!%p981_p4), %s251_s16, 128, %s253_s1, %s241_s29, %s2027_s24, %s2027_s24, %s2026_s2  }
  0x5a   : > { %p1770_p5 = por %p156_p8, %p2028_p0  ;;  %p162_p6 = scmp.ne.s32.totalorder %s2021_s5, %s2022_s20 }
  0x5b   : > { %s297_s7 = scalar_lea.hbm %s2024_s13, %s1638_s30  ;;  %s308_s18 = sand.u32 1, %s2020_s6  }
  0x5c   : > { %s299_s25 = sshll.u32 %s297_s7, 4  ;;  %p2030_p7 = scmp.eq.s32.totalorder %s1609_s12, 0  ;;  %s300_s25 = int_to_ptr.hbm [resolvable:$true] %s299_s25 }
  0x5d   : > { %989 = dma.hbm_to_vmem [thread:$0]  (!%p1668_p12), %s300_s25, 16, %s302_s10, %s1674_s0  }
  0x5e   : > { %s1766_s30 = scalar_select %p147_p13, %s2020_s6, %s149_s4  }
  0x5f   : > { %p1780_p2 = por %p162_p6, %p2030_p7  ;;  %s848_s29 = sshll.u32 %s308_s18, 6 }
  0x60   : > { %s317_s10 = sadd.s32 %s1466_s9, %s943_s27  ;;  %s2032_s16 = sld [smem:[#allocation40_spill]] }
  0x61   : > { %s851_s3 = sshll.u32 %s317_s10, 2  ;;  %s312_s7 = scalar_lea.vmem [#allocation10], %s848_s29 }
  0x62   : > { %s322_s15 = sshll.u32 %s312_s7, 4  ;;  %p2033_p12 = scmp.lt.s32.totalorder %s1474_s11, 8  ;;  %s323_s15 = int_to_ptr.vmem [resolvable:$true] %s322_s15 }
  0x63   : > { %s309_s20 = scalar_lea.sflag [#allocation11], %s308_s18  ;;  %s2034_s5 = smov 128  }
  0x64   : > { %p990_p13 = pnand %p2033_p12, %p1770_p5  ;;  %340 = sbr.rel (%p1682_p3) target bundleno = 528 (0x210), region = 40 }
  0x65   : > { %s342_s6 = sand.u32 (!%p1682_p3), 1, %s1442_s28  }
  0x66   : > { %s319_s13 = scalar_lea.hbm %s2032_s16, %s851_s3  ;;  %s1798_s25 = sshll.u32 (!%p1682_p3), %s342_s6, 3 }
  0x67   : > { %s320_s22 = sshll.u32 %s319_s13, 4  ;;  %s343_s4 = scalar_lea.sflag (!%p1682_p3), [#allocation5], %s342_s6  ;;  %s321_s22 = int_to_ptr.hbm [resolvable:$true] %s320_s22 }
  0x68   : > { %992 = dma.hbm_to_vmem [thread:$0]  (!%p990_p13), %s321_s22, 1024, %s323_s15, %s309_s20, %s2034_s5, %s2027_s24, %s2026_s2  }
  0x69   : > { %s346_s27 = scalar_lea.vmem [#allocation4], %s1798_s25 }
  0x6a   : > { %1385 = dma.done.wait (%p1706_p11), %s343_s4, 128  }
  0x6b   : > { %1387 = vsyncadd (%p1706_p11), %s343_s4, 4294967168  ;;  %s2035_s17 = sld [smem:[#allocation22_spill]]  ;;  %s352_s2 = sand.u32 1, %s1609_s12  }
  0x6c   : > { %s353_s29 = scalar_lea.sflag [#allocation8], %s352_s2 }
  0x71   : > { %s354_s24 = sand.u32 1, %s2035_s17  }
  0x72   : > { %s854_s23 = sshll.u32 %s354_s24, 6 }
  0x73   : > { %s1807_s10 = scalar_lea.vmem [#allocation7], %s854_s23 }
  0x74   : > { %1389 = dma.done.wait (%p1646_p9), %s353_s29, 1040  }
  0x75   : > { %1391 = vsyncadd (%p1646_p9), %s353_s29, 4294966256  ;;  %s2037_s3 = sld [smem:[#allocation20_spill]]  ;;  %s1814_s14 = scalar_lea.vmem [#allocation9], %s354_s24 }
  0x7b   : > { %s371_s0 = sand.u32 1, %s2037_s3  }
  0x7c   : > { %s855_s21 = sshll.u32 %s371_s0, 6  ;;  %s372_s16 = scalar_lea.sflag [#allocation11], %s371_s0 }
  0x7d   : > { %s1816_s13 = scalar_lea.vmem [#allocation10], %s855_s21 }
  0x7e   : > { %1393 = dma.done.wait (%p1780_p2), %s372_s16, 1024  }
  0x7f   : > { %1395 = vsyncadd (%p1780_p2), %s372_s16, 4294966272  ;;  %s2038_s12 = sld [smem:[#allocation25_spill]]  ;;  %s417_s7 = sand.u32 1, %s1406_s19  }
  0x80   : > { %s856_s15 = sshll.u32 %s417_s7, 4  ;;  %s2039_s6 = sld [smem:[#allocation41_spill]] }
  0x81   : > { %s1833_s17 = scalar_lea.vmem [#allocation12], %s856_s15 }
  0x85   : > { %p430_p9 = scmp.lt.s32.totalorder %s2038_s12, 1  ;;  %p857_p3 = scmp.ne.s32.totalorder %s2038_s12, 0 }
  0x86   : > { %s2040_s1 = sld [smem:[#allocation24_spill]] (!%p857_p3) }
  0x87   : > { %s1827_s22 = scalar_select %p430_p9, %s2038_s12, 1 }
  0x88   : > { %437 = sbr.rel (%p857_p3) target bundleno = 314 (0x13a), region = 60 }
  0x89   : > { %s432_s4 = scalar_lea.vmem %s2039_s6, %s1827_s22 }
  0x8c   : > { %s953_s18 = sshll.u32 (!%p857_p3), %s2040_s1, 3 }
  0x8d   : > { %v952_v0 = vld [vmem:[%s1807_s10 + $0x38] sm:$0xff]  ;;  %v951_v1 = vld [vmem:[%s1807_s10 + $0x30] sm:$0xff]  ;;  %v950_v2 = vld [vmem:[%s1807_s10 + $0x28] sm:$0xff]  ;;  %s534_s2 = scalar_lea.vmem [#allocation3], %s953_s18 }
  0x8e   : > { %514 = vmatpush.bf16.msra.mxu0 %v952_v0  ;;  %v949_v3 = vld [vmem:[%s1807_s10 + $0x20] sm:$0xff]  ;;  %v948_v4 = vld [vmem:[%s1807_s10 + $0x18] sm:$0xff]  ;;  %v947_v5 = vld [vmem:[%s1807_s10 + $0x10] sm:$0xff] }
  0x8f   : > { %v946_v6 = vld [vmem:[%s1807_s10 + $0x8] sm:$0xff]  ;;  %v945_v7 = vld [vmem:[%s1807_s10] sm:$0xff]  ;;  %v944_v8 = vld [vmem:[%s346_s27] sm:$0xff] }
  0x90   : > { %v1158_v10 = vld [vmem:[%s1814_s14] ss:$0 sm:$0xff] }
  0x92   : > { %515 = vmatpush.bf16.msra.mxu0 %v951_v1 }
  0x96   : > { %516 = vmatpush.bf16.msra.mxu0 %v950_v2 }
  0x9a   : > { %517 = vmatpush.bf16.msra.mxu0 %v949_v3 }
  0x9e   : > { %518 = vmatpush.bf16.msra.mxu0 %v948_v4 }
  0xa2   : > { %519 = vmatpush.bf16.msra.mxu0 %v947_v5 }
  0xa6   : > { %520 = vmatpush.bf16.msra.mxu0 %v946_v6 }
  0xaa   : > { %521 = vmatpush.bf16.msra.mxu0 %v945_v7 }
  0xad   : > { %522 = vmatmul.bf16.vlgmr.msra.gmra.mxu0 %v944_v8 }
 0x12a   : > { %v523_v9 = vpop.f32.mrf.mxu0 }
 0x12b   : > { %v524_v11 = vadd.f32 %v1158_v10, %v523_v9 }
 0x12d   : > { %v528_v14 = vmax.f32 %v524_v11, 0.0 }
 0x132   : > { %v525_v12 = vpop.f32.mrf.mxu0 }
 0x133   : > { %v526_v13 = vadd.f32 %v1158_v10, %v525_v12 }
 0x135   : > { %v529_v15 = vmax.f32 %v526_v13, 0.0 }
 0x137   : > { %v968_v16 = vpack.c.bf16 %v529_v15, %v528_v14 }
 0x139   : > { %969 = vst [vmem:[%s534_s2] sm:$0xff] %v968_v16  }
 0x13a PF: > { %s2041_s25 = sld [smem:[#allocation24_spill]]  ;;  %v963_v17 = vld [vmem:[%s1816_s13 + $0x38] sm:$0xff]  ;;  %v962_v18 = vld [vmem:[%s1816_s13 + $0x30] sm:$0xff]  ;;  %v961_v19 = vld [vmem:[%s1816_s13 + $0x28] sm:$0xff] }
 0x13b   : > { %612 = vmatpush.bf16.msra.mxu0 %v963_v17  ;;  %v960_v20 = vld [vmem:[%s1816_s13 + $0x20] sm:$0xff]  ;;  %v959_v21 = vld [vmem:[%s1816_s13 + $0x18] sm:$0xff]  ;;  %v958_v22 = vld [vmem:[%s1816_s13 + $0x10] sm:$0xff] }
 0x13c   : > { %v957_v23 = vld [vmem:[%s1816_s13 + $0x8] sm:$0xff]  ;;  %v956_v24 = vld [vmem:[%s1816_s13] sm:$0xff] }
 0x13f   : > { %613 = vmatpush.bf16.msra.mxu0 %v962_v18 }
 0x140   : > { %s954_s27 = sshll.u32 %s2041_s25, 3  ;;  %p934_p11 = scmp.ne.s32.totalorder %s2041_s25, 0 }
 0x141   : > { %s539_s24 = scalar_lea.vmem [#allocation3], %s954_s27 }
 0x142   : > { %v955_v25 = vld [vmem:[%s539_s24] sm:$0xff] }
 0x143   : > { %614 = vmatpush.bf16.msra.mxu0 %v961_v19 }
 0x147   : > { %615 = vmatpush.bf16.msra.mxu0 %v960_v20 }
 0x14b   : > { %616 = vmatpush.bf16.msra.mxu0 %v959_v21 }
 0x14f   : > { %617 = vmatpush.bf16.msra.mxu0 %v958_v22 }
 0x153   : > { %618 = vmatpush.bf16.msra.mxu0 %v957_v23 }
 0x157   : > { %619 = vmatpush.bf16.msra.mxu0 %v956_v24 }
 0x15a   : > { %620 = vmatmul.bf16.vlgmr.msra.gmra.mxu0 %v955_v25 }
 0x1d7   : > { %v621_v26 = vpop.f32.mrf.mxu0 }
 0x1db   : > { %629 = sbr.rel (%p934_p11) target bundleno = 483 (0x1e3), region = 64 }
 0x1df   : > { %v623_v27 = vpop.f32.mrf.mxu0 }
 0x1e0   : > { %v1479_v28 = vmov 0.0  }
 0x1e1   : > { %630 = vst [vmem:[#allocation2] sm:$0xff] %v1479_v28 }
 0x1e2   : > { %631 = vst [vmem:[#allocation2 + $0x8] sm:$0xff] %v1479_v28 }
 0x1e3 PF: > { %s2042_s23 = sld [smem:[#allocation24_spill]] }
 0x1e8   : > { %v632_v29 = vld [vmem:[#allocation2] sm:$0xff] }
 0x1e9   : > { %v633_v30 = vld [vmem:[#allocation2 + $0x8] sm:$0xff]  ;;  %v634_v31 = vadd.f32 %v632_v29, %v621_v26  ;;  %p935_p4 = scmp.ne.s32.totalorder %s2042_s23, 1 }
 0x1ea   : > { %v635_v32 = vadd.f32 %v633_v30, %v623_v27 }
 0x1eb   : > { %636 = vst [vmem:[#allocation2] sm:$0xff] %v634_v31  ;;  %641 = sbr.rel (%p935_p4) target bundleno = 503 (0x1f7), region = 68 }
 0x1ec   : > { %637 = vst [vmem:[#allocation2 + $0x8] sm:$0xff] %v635_v32 }
 0x1f0   : > { %v1159_v34 = vld [vmem:[%s432_s4] ss:$0 sm:$0xff] }
 0x1f2   : > { %v642_v33 = vld [vmem:[#allocation2] sm:$0xff] }
 0x1f3   : > { %v643_v35 = vld [vmem:[#allocation2 + $0x8] sm:$0xff]  ;;  %v648_v36 = vadd.f32 %v1159_v34, %v642_v33 }
 0x1f4   : > { %v649_v37 = vadd.f32 %v1159_v34, %v643_v35 }
 0x1f5   : > { %650 = vst [vmem:[%s1833_s17] sm:$0xff] %v648_v36 }
 0x1f6   : > { %651 = vst [vmem:[%s1833_s17 + $0x8] sm:$0xff] %v649_v37 }
 0x1f7 PF: > { %s2044_s0 = sld [smem:[#allocation26_spill]]  ;;  %s667_s12 = sshll.u32 %s1833_s17, 4  ;;  %s668_s12 = int_to_ptr.vmem [resolvable:$true] %s667_s12 }
 0x1f8   : > { %s2045_s21 = sld [smem:[#allocation25_spill]]  ;;  %s653_s1 = scalar_lea.sflag [#allocation6], %s417_s7 }
 0x1f9   : > { %s2047_s5 = sld [smem:[#allocation42_spill]] }
 0x1fd   : > { %s964_s16 = sshll.u32 %s2044_s0, 2 }
 0x1fe   : > { %s664_s13 = sadd.s32 %s2045_s21, %s964_s16 }
 0x1ff   : > { %s939_s15 = sshll.u32 %s664_s13, 3  ;;  %s1300_s17 = scalar_lea.hbm %s2047_s5, 64 }
 0x200   : > { %s666_s6 = scalar_lea.hbm %s2047_s5, %s939_s15 }
 0x201   : > { %s669_s4 = sshll.u32 %s666_s6, 4  ;;  %s670_s4 = int_to_ptr.hbm [resolvable:$true] %s669_s4 }
 0x202   : > { %s1294_s18 = sshra.s32 %s670_s4, 4  ;;  %s1295_s18 = int_to_ptr.hbm [resolvable:$true] %s1294_s18 }
 0x203   : > { %s1296_s2 = scalar_lea.hbm %s1295_s18, 16  ;;  %p1301_p6 = scmp.lt.s32.totalorder %s1295_s18, %s2047_s5 }
 0x204   : > { %p1297_p8 = scmp.ne.s32.totalorder %s1295_s18, %s1296_s2  ;;  %p1302_p7 = scmp.lt.s32.totalorder %s1300_s17, %s1296_s2 }
 0x206   : > { %p1298_p0 = pnand %p1297_p8, %p1731_p1  ;;  %p1303_p2 = por %p1302_p7, %p1301_p6 }
 0x208   : > { %p1299_p5 = pneg %p1298_p0 }
 0x20a   : > { %p1304_p12 = pnand %p1303_p2, %p1299_p5 }
 0x20c   : > { %1307 = shalt.err (!%p1304_p12)
}
 0x20d   : > { %s1480_s7 = smov 128   ;;  %s1481_s29 = smov 256  }
 0x20e   : > { %s1482_s10 = smov 8  }
 0x20f   : > { %978 = dma.vmem_to_hbm [thread:$0]  (%p1731_p1), %s668_s12, 256, %s670_s4, %s653_s1, %s1480_s7, %s1481_s29, %s1482_s10  }
 0x210 PF: > { %s2048_s3 = sld [smem:[#allocation17_spill]]  ;;  %p998_p13 = scmp.ge.s32.totalorder %s1474_s11, 2 }
 0x212   : > { %p994_p9 = pnand %p998_p13, %p1735_p10 }
 0x214   : > { %p995_p3 = pneg %p994_p9 }
 0x216   : > { %s684_s21 = sand.u32 1, %s2048_s3  }
 0x217   : > { %s685_s16 = scalar_lea.sflag [#allocation6], %s684_s21 }
 0x218   : > { %1397 = dma.done.wait (%p995_p3), %s685_s16, 256  }
 0x219   : > { %1399 = vsyncadd (%p995_p3), %s685_s16, 4294967040  ;;  %s27_s11 = sadd.s32 1, %s1474_s11   ;;  %s2051_s14 = sld [smem:[#allocation18_spill]] }
 0x21a   : > { %p1889_p11 = scmp.ge.s32.totalorder %s27_s11, 10   ;;  %s2052_s20 = sld [smem:[#allocation34_spill]] }
 0x21b   : > { %s2053_s21 = sld [smem:[#allocation20_spill]]  ;;  %s2061_s18 = smov %s1406_s19 }
 0x21c   : > { %s2054_s22 = sld [smem:[#allocation21_spill]]  ;;  %s2065_s23 = smov %s1766_s30 }
 0x21d   : > { %s2055_s24 = sld [smem:[#allocation22_spill]]  ;;  %s2066_s25 = smov %s1434_s26 }
 0x21e   : > { %s2056_s12 = sld [smem:[#allocation31_spill]]  ;;  %s2068_s27 = smov %s1442_s28 }
 0x21f   : > { %s2057_s15 = sld [smem:[#allocation23_spill]]  ;;  %s2063_s19 = smov %s2051_s14 }
 0x220   : > { %s2058_s29 = sld [smem:[#allocation33_spill]]  ;;  %s2070_s30 = smov %s1462_s8 }
 0x221   : > { %s2059_s7 = sld [smem:[#allocation27_spill]]  ;;  %s2071_s6 = smov %s1466_s9 }
 0x222   : > { %s2060_s4 = sld [smem:[#allocation28_spill]] }
 0x223   : > { %s2062_s1 = sld [smem:[#allocation29_spill]] }
 0x224   : > { %s2064_s10 = sld [smem:[#allocation32_spill]]  ;;  %s2067_s26 = smov %s2056_s12 }
 0x225   : > { %s2069_s28 = smov %s2057_s15  ;;  %26 = sbr.rel (!%p1889_p11) target bundleno = 24 (0x18), region = 139 }
 0x228   : > { %s2072_s8 = smov %s2060_s4 }
 0x229   : > { %s2073_s9 = smov %s2062_s1 }
 0x22a   :  { %691 = vsyncpa [#allocation5], 1 }
 0x22b   :  { %693 = vsyncpa [#allocation5 + $0x1], 1 }
 0x22c   :  { %694 = vsyncpa [#allocation8], 1 }
 0x22d   :  { %696 = vsyncpa [#allocation8 + $0x1], 1 }
 0x22e   :  { %697 = vsyncpa [#allocation11], 1 }
 0x22f   :  { %699 = vsyncpa [#allocation11 + $0x1], 1 }
 0x230   :  { %700 = vsyncpa [#allocation6], 1 }
 0x231   :  { %702 = vsyncpa [#allocation6 + $0x1], 1 }

</bundles_post_ra>
